<compile_context>
chip_gen: v5e
topology: v5e:2x2
jax: 0.10.0
libtpu: 0.0.40
codegen_flags: <defaults>
</compile_context>

<pallas_src>
import jax
import jax.numpy as jnp
from jax.experimental import pallas as pl
from jax.experimental.pallas import tpu as pltpu

PAD = 8   # state dim 7 padded to 8
F32 = jnp.float32


def _kf_step_kernel(bbox_ref,                 # SMEM (4,)  [x1, y1, x2, y2]
                    x_ref, sigma_ref,         # VMEM (1,8), (8,8)
                    x_out_ref, sigma_out_ref  # VMEM (1,8), (8,8)
                    ):
    rowi = jax.lax.broadcasted_iota(jnp.int32, (PAD, PAD), 0)
    coli = jax.lax.broadcasted_iota(jnp.int32, (PAD, PAD), 1)
    lane = jax.lax.broadcasted_iota(jnp.int32, (1, PAD), 1)
    diag = rowi == coli
    eye = diag.astype(F32)

    # ---- constants baked in (fixed by the module's __init__; no DMA needed) ----
    # R = eye(7); R[6,6] *= 0.01; R[4:,4:] *= 0.01  -> diag [1,1,1,1,.01,.01,1e-4,0]
    r_diag = jnp.where(coli < 4, 1.0,
             jnp.where(coli < 6, 0.01,
             jnp.where(coli < 7, 1e-4, 0.0)))
    R_pad = jnp.where(diag, r_diag, 0.0)
    # Q = eye(4); Q[2:,2:] *= 10  -> diag [1,1,10,10] (zero padded)
    q_diag = jnp.where(coli < 2, 1.0, jnp.where(coli < 4, 10.0, 0.0))
    Q_pad = jnp.where(diag, q_diag, 0.0)

    X = x_ref[...]        # (1, 8), lane 7 is zero padding
    Sig = sigma_ref[...]  # (8, 8), row/col 7 are zero padding

    # ---- predict:  x <- A x ;  Sigma <- A Sigma A^T + R ------------------------
    # A = I + E with E[0,4] = E[1,5] = E[2,6] = 1:
    #   row-vector state:  x A^T = x + (x[4], x[5], x[6]) placed in lanes 0..2
    #   covariance:        T = Sig A^T (cols 4..6 added into cols 0..2),
    #                      Sp = A T + R (rows 4..6 of T added into rows 0..2).
    Xp = X + (jnp.where(lane == 0, X[:, 4:5], 0.0)
              + jnp.where(lane == 1, X[:, 5:6], 0.0)
              + jnp.where(lane == 2, X[:, 6:7], 0.0))
    T = Sig + (jnp.where(coli == 0, Sig[:, 4:5], 0.0)
               + jnp.where(coli == 1, Sig[:, 5:6], 0.0)
               + jnp.where(coli == 2, Sig[:, 6:7], 0.0))
    Sp = T + (jnp.where(rowi == 0, T[4:5, :], 0.0)
              + jnp.where(rowi == 1, T[5:6, :], 0.0)
              + jnp.where(rowi == 2, T[6:7, :], 0.0)) + R_pad

    # ---- observation z = box2state(bbox) as a (1, 8) lane row ------------------
    x1 = bbox_ref[0]
    y1 = bbox_ref[1]
    x2 = bbox_ref[2]
    y2 = bbox_ref[3]
    cx = (x1 + x2) * 0.5
    cy = (y1 + y2) * 0.5
    w = x2 - x1 + 1.0
    h = y2 - y1 + 1.0
    area = w * h
    aspect = h / w
    z = jnp.where(lane == 0, cx,
        jnp.where(lane == 1, cy,
        jnp.where(lane == 2, area,
        jnp.where(lane == 3, aspect, 0.0))))

    # ---- update -----------------------------------------------------------------
    # C = [I4 | 0]  =>  C Sp C^T = Sp[:4,:4],  Sp C^T = Sp[:,:4],  C x = x[:4].
    M = jnp.where((rowi < 4) & (coli < 4), Sp, 0.0) + Q_pad   # S = C Sp C^T + Q
    Inv = eye

    # Gauss-Jordan on the 4x4 block only (rows/cols 4..7 of M are decoupled zeros,
    # so four unrolled iterations with static slices give exactly inv(S) in the
    # top-left block, and rows 4..7 of Inv's first four columns stay zero).
    for i in range(4):
        m_row = M[i:i + 1, :]              # (1, 8) static sublane slice
        i_row = Inv[i:i + 1, :]
        pivot = m_row[:, i:i + 1]          # (1, 1)
        # NOTE: exact reciprocal on purpose.  pl.reciprocal(approx=True) is too
        # coarse here: the covariance update cancels ~1e4-sized terms down to O(1),
        # so any pivot error is amplified by ~|S| and would blow the 1e-3 tolerance.
        inv_p = 1.0 / pivot
        m_row_n = m_row * inv_p
        i_row_n = i_row * inv_p
        fac = M[:, i:i + 1]                # (8, 1) static lane slice
        is_piv = rowi == i
        M = jnp.where(is_piv, m_row_n, M - fac * m_row_n)
        Inv = jnp.where(is_piv, i_row_n, Inv - fac * i_row_n)

    # K^T = inv(S) C Sp   (rows 4..7 are zero) — four rank-1 (VPU) updates.
    KT = (Inv[:, 0:1] * Sp[0:1, :] + Inv[:, 1:2] * Sp[1:2, :]
          + Inv[:, 2:3] * Sp[2:3, :] + Inv[:, 3:4] * Sp[3:4, :])

    innov = jnp.where(lane < 4, z - Xp, 0.0)          # z - C x  (lanes 0..3)

    # x <- x + (z - C x)^T K^T   (row-vector convention)
    Xn = Xp + (innov[:, 0:1] * KT[0:1, :] + innov[:, 1:2] * KT[1:2, :]
               + innov[:, 2:3] * KT[2:3, :] + innov[:, 3:4] * KT[3:4, :])

    # Sigma <- (I - K C) Sigma = Sp - (Sp C^T) K^T
    Sn = Sp - (Sp[:, 0:1] * KT[0:1, :] + Sp[:, 1:2] * KT[1:2, :]
               + Sp[:, 2:3] * KT[2:3, :] + Sp[:, 3:4] * KT[3:4, :])

    x_out_ref[...] = Xn
    sigma_out_ref[...] = Sn


@jax.jit
def kf_forward(X, Sigma, bbox):
    """forward(bbox): predict() then update(bbox). Returns (X_new, Sigma_new)."""
    # Only the (tiny, per-call) state is padded here; all constant matrices are
    # baked into the kernel, so there is no per-call constant padding / DMA.
    X_p = jnp.zeros((1, PAD), F32).at[0, :7].set(X.astype(F32))
    S_p = jnp.zeros((PAD, PAD), F32).at[:7, :7].set(Sigma.astype(F32))

    vmem = pl.BlockSpec(memory_space=pltpu.MemorySpace.VMEM)
    smem = pl.BlockSpec(memory_space=pltpu.MemorySpace.SMEM)

    # Note: a lane-batched (many-tracks) / time-gridded variant would amortize the
    # launch + DMA overhead further; the module spec is a single stateful filter,
    # so a single-step kernel is kept.
    x_out, s_out = pl.pallas_call(
        _kf_step_kernel,
        out_shape=(jax.ShapeDtypeStruct((1, PAD), F32),
                   jax.ShapeDtypeStruct((PAD, PAD), F32)),
        in_specs=[smem, vmem, vmem],
        out_specs=(vmem, vmem),
    )(bbox.astype(F32), X_p, S_p)

    return x_out[0, :7], s_out[:7, :7]


# --------------------------- pure-JAX reference ---------------------------------

def make_kf_params():
    """Deterministic parameters, mirroring ConstantVelocityKalmanFilter.__init__."""
    A = jnp.eye(7, dtype=F32)
    A = A.at[jnp.array([0, 1, 2]), jnp.array([4, 5, 6])].set(1.0)
    R = jnp.eye(7, dtype=F32)
    R = R.at[-1, -1].multiply(0.01)
    R = R.at[4:, 4:].multiply(0.01)
    C = jnp.concatenate([jnp.eye(4, dtype=F32), jnp.zeros((4, 3), F32)], axis=1)
    Q = jnp.eye(4, dtype=F32)
    Q = Q.at[2:, 2:].multiply(10.0)
    return A, R, C, Q


def box2state(bbox):
    x1, y1, x2, y2 = bbox
    cx = (x1 + x2) / 2
    cy = (y1 + y2) / 2
    s = (x2 - x1 + 1) * (y2 - y1 + 1)
    r = (y2 - y1 + 1) / (x2 - x1 + 1)
    return jnp.array([cx, cy, s, r], F32)


def initialize(bbox):
    """Mirror of ConstantVelocityKalmanFilter.initialize."""
    z = box2state(bbox)
    X = jnp.concatenate([z, jnp.zeros(3, F32)])
    Sigma = jnp.eye(7, dtype=F32)
    Sigma = Sigma.at[4:, 4:].multiply(1000.0)
    Sigma = Sigma * 10.0
    return X, Sigma


def ref_forward(X, Sigma, bbox, A, R, C, Q):
    """Pure-JAX reference mirroring the PyTorch forward()."""
    X = A @ X
    Sigma = A @ Sigma @ A.T + R
    z = box2state(bbox)
    S = C @ Sigma @ C.T + Q
    K = Sigma @ C.T @ jnp.linalg.inv(S)
    X = X + K @ (z - C @ X)
    Sigma = (jnp.eye(7, dtype=F32) - K @ C) @ Sigma
    return X, Sigma


if __name__ == "__main__":
    key = jax.random.PRNGKey(0)
    k1, k2 = jax.random.split(key)
    xy0 = jax.random.uniform(k1, (2,), minval=0.0, maxval=20.0)
    wh0 = jax.random.uniform(k2, (2,), minval=5.0, maxval=15.0)
    bbox0 = jnp.array([xy0[0], xy0[1], xy0[0] + wh0[0], xy0[1] + wh0[1]], F32)
    # second (shifted) observation fed to forward()
    bbox1 = bbox0 + jnp.array([1.5, -0.75, 2.0, 0.5], F32)

    A, R, C, Q = make_kf_params()
    X0, Sigma0 = initialize(bbox0)

    X1, Sigma1 = kf_forward(X0, Sigma0, bbox1)
    jax.block_until_ready((X1, Sigma1))

    Xr, Sr = ref_forward(X0, Sigma0, bbox1, A, R, C, Q)
    assert jnp.allclose(X1, Xr, rtol=1e-3, atol=1e-3), (X1, Xr)
    assert jnp.allclose(Sigma1, Sr, rtol=1e-3, atol=1e-3), (Sigma1, Sr)

    print("KERNEL_OK")
</pallas_src>

<mosaic_0001>
module attributes {stable_mosaic.version = 11 : i64} {
  func.func @_kf_step_kernel(%arg0: memref<4xf32, #tpu.memory_space<smem>>, %arg1: memref<1x8xf32, #tpu.memory_space<vmem>>, %arg2: memref<8x8xf32, #tpu.memory_space<vmem>>, %arg3: memref<1x8xf32, #tpu.memory_space<vmem>>, %arg4: memref<8x8xf32, #tpu.memory_space<vmem>>) attributes {dimension_semantics = [], scalar_prefetch = 0 : i64, scratch_operands = 0 : i64, tpu.core_type = #tpu.core_type<tc>} {
    %0 = tpu.iota {dimensions = array<i32: 0>} : vector<8x8xi32>
    %1 = tpu.iota {dimensions = array<i32: 1>} : vector<8x8xi32>
    %2 = tpu.iota {dimensions = array<i32: 1>} : vector<1x8xi32>
    %3 = arith.cmpi eq, %0, %1 : vector<8x8xi32>
    %4 = arith.extui %3 : vector<8x8xi1> to vector<8x8xi32>
    %5 = arith.sitofp %4 : vector<8x8xi32> to vector<8x8xf32>
    %c4_i32 = arith.constant 4 : i32
    %6 = vector.broadcast %c4_i32 : i32 to vector<8x8xi32>
    %7 = arith.cmpi slt, %1, %6 : vector<8x8xi32>
    %c6_i32 = arith.constant 6 : i32
    %8 = vector.broadcast %c6_i32 : i32 to vector<8x8xi32>
    %9 = arith.cmpi slt, %1, %8 : vector<8x8xi32>
    %c7_i32 = arith.constant 7 : i32
    %10 = vector.broadcast %c7_i32 : i32 to vector<8x8xi32>
    %11 = arith.cmpi slt, %1, %10 : vector<8x8xi32>
    %cst = arith.constant 9.99999974E-5 : f32
    %cst_0 = arith.constant 0.000000e+00 : f32
    %12 = vector.broadcast %cst : f32 to vector<8x8xf32>
    %13 = vector.broadcast %cst_0 : f32 to vector<8x8xf32>
    %14 = arith.select %11, %12, %13 : vector<8x8xi1>, vector<8x8xf32>
    %cst_1 = arith.constant 0.00999999977 : f32
    %15 = vector.broadcast %cst_1 : f32 to vector<8x8xf32>
    %16 = arith.select %9, %15, %14 : vector<8x8xi1>, vector<8x8xf32>
    %cst_2 = arith.constant 1.000000e+00 : f32
    %17 = vector.broadcast %cst_2 : f32 to vector<8x8xf32>
    %18 = arith.select %7, %17, %16 : vector<8x8xi1>, vector<8x8xf32>
    %cst_3 = arith.constant 0.000000e+00 : f32
    %19 = vector.broadcast %cst_3 : f32 to vector<8x8xf32>
    %20 = arith.select %3, %18, %19 : vector<8x8xi1>, vector<8x8xf32>
    %c2_i32 = arith.constant 2 : i32
    %21 = vector.broadcast %c2_i32 : i32 to vector<8x8xi32>
    %22 = arith.cmpi slt, %1, %21 : vector<8x8xi32>
    %c4_i32_4 = arith.constant 4 : i32
    %23 = vector.broadcast %c4_i32_4 : i32 to vector<8x8xi32>
    %24 = arith.cmpi slt, %1, %23 : vector<8x8xi32>
    %cst_5 = arith.constant 1.000000e+01 : f32
    %cst_6 = arith.constant 0.000000e+00 : f32
    %25 = vector.broadcast %cst_5 : f32 to vector<8x8xf32>
    %26 = vector.broadcast %cst_6 : f32 to vector<8x8xf32>
    %27 = arith.select %24, %25, %26 : vector<8x8xi1>, vector<8x8xf32>
    %cst_7 = arith.constant 1.000000e+00 : f32
    %28 = vector.broadcast %cst_7 : f32 to vector<8x8xf32>
    %29 = arith.select %22, %28, %27 : vector<8x8xi1>, vector<8x8xf32>
    %cst_8 = arith.constant 0.000000e+00 : f32
    %30 = vector.broadcast %cst_8 : f32 to vector<8x8xf32>
    %31 = arith.select %3, %29, %30 : vector<8x8xi1>, vector<8x8xf32>
    %c0 = arith.constant 0 : index
    %c0_9 = arith.constant 0 : index
    %32 = vector.load %arg1[%c0, %c0_9] : memref<1x8xf32, #tpu.memory_space<vmem>>, vector<1x8xf32>
    %c0_10 = arith.constant 0 : index
    %c0_11 = arith.constant 0 : index
    %33 = vector.load %arg2[%c0_10, %c0_11] : memref<8x8xf32, #tpu.memory_space<vmem>>, vector<8x8xf32>
    %c0_i32 = arith.constant 0 : i32
    %34 = vector.broadcast %c0_i32 : i32 to vector<1x8xi32>
    %35 = arith.cmpi eq, %2, %34 : vector<1x8xi32>
    %36 = vector.extract_strided_slice %32 {offsets = [0, 4], sizes = [1, 1], strides = [1, 1]} : vector<1x8xf32> to vector<1x1xf32>
    %cst_12 = arith.constant 0.000000e+00 : f32
    %37 = vector.shape_cast %36 : vector<1x1xf32> to vector<1x1xf32>
    %38 = vector.broadcast %37 : vector<1x1xf32> to vector<1x8xf32>
    %39 = vector.broadcast %cst_12 : f32 to vector<1x8xf32>
    %40 = arith.select %35, %38, %39 : vector<1x8xi1>, vector<1x8xf32>
    %c1_i32 = arith.constant 1 : i32
    %41 = vector.broadcast %c1_i32 : i32 to vector<1x8xi32>
    %42 = arith.cmpi eq, %2, %41 : vector<1x8xi32>
    %43 = vector.extract_strided_slice %32 {offsets = [0, 5], sizes = [1, 1], strides = [1, 1]} : vector<1x8xf32> to vector<1x1xf32>
    %cst_13 = arith.constant 0.000000e+00 : f32
    %44 = vector.shape_cast %43 : vector<1x1xf32> to vector<1x1xf32>
    %45 = vector.broadcast %44 : vector<1x1xf32> to vector<1x8xf32>
    %46 = vector.broadcast %cst_13 : f32 to vector<1x8xf32>
    %47 = arith.select %42, %45, %46 : vector<1x8xi1>, vector<1x8xf32>
    %48 = arith.addf %40, %47 : vector<1x8xf32>
    %c2_i32_14 = arith.constant 2 : i32
    %49 = vector.broadcast %c2_i32_14 : i32 to vector<1x8xi32>
    %50 = arith.cmpi eq, %2, %49 : vector<1x8xi32>
    %51 = vector.extract_strided_slice %32 {offsets = [0, 6], sizes = [1, 1], strides = [1, 1]} : vector<1x8xf32> to vector<1x1xf32>
    %cst_15 = arith.constant 0.000000e+00 : f32
    %52 = vector.shape_cast %51 : vector<1x1xf32> to vector<1x1xf32>
    %53 = vector.broadcast %52 : vector<1x1xf32> to vector<1x8xf32>
    %54 = vector.broadcast %cst_15 : f32 to vector<1x8xf32>
    %55 = arith.select %50, %53, %54 : vector<1x8xi1>, vector<1x8xf32>
    %56 = arith.addf %48, %55 : vector<1x8xf32>
    %57 = arith.addf %32, %56 : vector<1x8xf32>
    %c0_i32_16 = arith.constant 0 : i32
    %58 = vector.broadcast %c0_i32_16 : i32 to vector<8x8xi32>
    %59 = arith.cmpi eq, %1, %58 : vector<8x8xi32>
    %60 = vector.extract_strided_slice %33 {offsets = [0, 4], sizes = [8, 1], strides = [1, 1]} : vector<8x8xf32> to vector<8x1xf32>
    %cst_17 = arith.constant 0.000000e+00 : f32
    %61 = vector.shape_cast %60 : vector<8x1xf32> to vector<8x1xf32>
    %62 = vector.broadcast %61 : vector<8x1xf32> to vector<8x8xf32>
    %63 = vector.broadcast %cst_17 : f32 to vector<8x8xf32>
    %64 = arith.select %59, %62, %63 : vector<8x8xi1>, vector<8x8xf32>
    %c1_i32_18 = arith.constant 1 : i32
    %65 = vector.broadcast %c1_i32_18 : i32 to vector<8x8xi32>
    %66 = arith.cmpi eq, %1, %65 : vector<8x8xi32>
    %67 = vector.extract_strided_slice %33 {offsets = [0, 5], sizes = [8, 1], strides = [1, 1]} : vector<8x8xf32> to vector<8x1xf32>
    %cst_19 = arith.constant 0.000000e+00 : f32
    %68 = vector.shape_cast %67 : vector<8x1xf32> to vector<8x1xf32>
    %69 = vector.broadcast %68 : vector<8x1xf32> to vector<8x8xf32>
    %70 = vector.broadcast %cst_19 : f32 to vector<8x8xf32>
    %71 = arith.select %66, %69, %70 : vector<8x8xi1>, vector<8x8xf32>
    %72 = arith.addf %64, %71 : vector<8x8xf32>
    %c2_i32_20 = arith.constant 2 : i32
    %73 = vector.broadcast %c2_i32_20 : i32 to vector<8x8xi32>
    %74 = arith.cmpi eq, %1, %73 : vector<8x8xi32>
    %75 = vector.extract_strided_slice %33 {offsets = [0, 6], sizes = [8, 1], strides = [1, 1]} : vector<8x8xf32> to vector<8x1xf32>
    %cst_21 = arith.constant 0.000000e+00 : f32
    %76 = vector.shape_cast %75 : vector<8x1xf32> to vector<8x1xf32>
    %77 = vector.broadcast %76 : vector<8x1xf32> to vector<8x8xf32>
    %78 = vector.broadcast %cst_21 : f32 to vector<8x8xf32>
    %79 = arith.select %74, %77, %78 : vector<8x8xi1>, vector<8x8xf32>
    %80 = arith.addf %72, %79 : vector<8x8xf32>
    %81 = arith.addf %33, %80 : vector<8x8xf32>
    %c0_i32_22 = arith.constant 0 : i32
    %82 = vector.broadcast %c0_i32_22 : i32 to vector<8x8xi32>
    %83 = arith.cmpi eq, %0, %82 : vector<8x8xi32>
    %84 = vector.extract_strided_slice %81 {offsets = [4, 0], sizes = [1, 8], strides = [1, 1]} : vector<8x8xf32> to vector<1x8xf32>
    %cst_23 = arith.constant 0.000000e+00 : f32
    %85 = vector.shape_cast %84 : vector<1x8xf32> to vector<1x8xf32>
    %86 = vector.broadcast %85 : vector<1x8xf32> to vector<8x8xf32>
    %87 = vector.broadcast %cst_23 : f32 to vector<8x8xf32>
    %88 = arith.select %83, %86, %87 : vector<8x8xi1>, vector<8x8xf32>
    %c1_i32_24 = arith.constant 1 : i32
    %89 = vector.broadcast %c1_i32_24 : i32 to vector<8x8xi32>
    %90 = arith.cmpi eq, %0, %89 : vector<8x8xi32>
    %91 = vector.extract_strided_slice %81 {offsets = [5, 0], sizes = [1, 8], strides = [1, 1]} : vector<8x8xf32> to vector<1x8xf32>
    %cst_25 = arith.constant 0.000000e+00 : f32
    %92 = vector.shape_cast %91 : vector<1x8xf32> to vector<1x8xf32>
    %93 = vector.broadcast %92 : vector<1x8xf32> to vector<8x8xf32>
    %94 = vector.broadcast %cst_25 : f32 to vector<8x8xf32>
    %95 = arith.select %90, %93, %94 : vector<8x8xi1>, vector<8x8xf32>
    %96 = arith.addf %88, %95 : vector<8x8xf32>
    %c2_i32_26 = arith.constant 2 : i32
    %97 = vector.broadcast %c2_i32_26 : i32 to vector<8x8xi32>
    %98 = arith.cmpi eq, %0, %97 : vector<8x8xi32>
    %99 = vector.extract_strided_slice %81 {offsets = [6, 0], sizes = [1, 8], strides = [1, 1]} : vector<8x8xf32> to vector<1x8xf32>
    %cst_27 = arith.constant 0.000000e+00 : f32
    %100 = vector.shape_cast %99 : vector<1x8xf32> to vector<1x8xf32>
    %101 = vector.broadcast %100 : vector<1x8xf32> to vector<8x8xf32>
    %102 = vector.broadcast %cst_27 : f32 to vector<8x8xf32>
    %103 = arith.select %98, %101, %102 : vector<8x8xi1>, vector<8x8xf32>
    %104 = arith.addf %96, %103 : vector<8x8xf32>
    %105 = arith.addf %81, %104 : vector<8x8xf32>
    %106 = arith.addf %105, %20 : vector<8x8xf32>
    %c0_28 = arith.constant 0 : index
    %107 = memref.load %arg0[%c0_28] : memref<4xf32, #tpu.memory_space<smem>>
    %c1 = arith.constant 1 : index
    %108 = memref.load %arg0[%c1] : memref<4xf32, #tpu.memory_space<smem>>
    %c2 = arith.constant 2 : index
    %109 = memref.load %arg0[%c2] : memref<4xf32, #tpu.memory_space<smem>>
    %c3 = arith.constant 3 : index
    %110 = memref.load %arg0[%c3] : memref<4xf32, #tpu.memory_space<smem>>
    %111 = arith.addf %107, %109 : f32
    %cst_29 = arith.constant 5.000000e-01 : f32
    %112 = arith.mulf %111, %cst_29 : f32
    %113 = arith.addf %108, %110 : f32
    %cst_30 = arith.constant 5.000000e-01 : f32
    %114 = arith.mulf %113, %cst_30 : f32
    %115 = arith.subf %109, %107 : f32
    %cst_31 = arith.constant 1.000000e+00 : f32
    %116 = arith.addf %115, %cst_31 : f32
    %117 = arith.subf %110, %108 : f32
    %cst_32 = arith.constant 1.000000e+00 : f32
    %118 = arith.addf %117, %cst_32 : f32
    %119 = arith.mulf %116, %118 : f32
    %120 = arith.divf %118, %116 : f32
    %c0_i32_33 = arith.constant 0 : i32
    %121 = vector.broadcast %c0_i32_33 : i32 to vector<1x8xi32>
    %122 = arith.cmpi eq, %2, %121 : vector<1x8xi32>
    %c1_i32_34 = arith.constant 1 : i32
    %123 = vector.broadcast %c1_i32_34 : i32 to vector<1x8xi32>
    %124 = arith.cmpi eq, %2, %123 : vector<1x8xi32>
    %c2_i32_35 = arith.constant 2 : i32
    %125 = vector.broadcast %c2_i32_35 : i32 to vector<1x8xi32>
    %126 = arith.cmpi eq, %2, %125 : vector<1x8xi32>
    %c3_i32 = arith.constant 3 : i32
    %127 = vector.broadcast %c3_i32 : i32 to vector<1x8xi32>
    %128 = arith.cmpi eq, %2, %127 : vector<1x8xi32>
    %cst_36 = arith.constant 0.000000e+00 : f32
    %129 = vector.broadcast %120 : f32 to vector<1x8xf32>
    %130 = vector.broadcast %cst_36 : f32 to vector<1x8xf32>
    %131 = arith.select %128, %129, %130 : vector<1x8xi1>, vector<1x8xf32>
    %132 = vector.broadcast %119 : f32 to vector<1x8xf32>
    %133 = arith.select %126, %132, %131 : vector<1x8xi1>, vector<1x8xf32>
    %134 = vector.broadcast %114 : f32 to vector<1x8xf32>
    %135 = arith.select %124, %134, %133 : vector<1x8xi1>, vector<1x8xf32>
    %136 = vector.broadcast %112 : f32 to vector<1x8xf32>
    %137 = arith.select %122, %136, %135 : vector<1x8xi1>, vector<1x8xf32>
    %c4_i32_37 = arith.constant 4 : i32
    %138 = vector.broadcast %c4_i32_37 : i32 to vector<8x8xi32>
    %139 = arith.cmpi slt, %0, %138 : vector<8x8xi32>
    %c4_i32_38 = arith.constant 4 : i32
    %140 = vector.broadcast %c4_i32_38 : i32 to vector<8x8xi32>
    %141 = arith.cmpi slt, %1, %140 : vector<8x8xi32>
    %142 = arith.andi %139, %141 : vector<8x8xi1>
    %cst_39 = arith.constant 0.000000e+00 : f32
    %143 = vector.broadcast %cst_39 : f32 to vector<8x8xf32>
    %144 = arith.select %142, %106, %143 : vector<8x8xi1>, vector<8x8xf32>
    %145 = arith.addf %144, %31 : vector<8x8xf32>
    %146 = vector.extract_strided_slice %145 {offsets = [0, 0], sizes = [1, 8], strides = [1, 1]} : vector<8x8xf32> to vector<1x8xf32>
    %147 = vector.extract_strided_slice %5 {offsets = [0, 0], sizes = [1, 8], strides = [1, 1]} : vector<8x8xf32> to vector<1x8xf32>
    %148 = vector.extract_strided_slice %146 {offsets = [0, 0], sizes = [1, 1], strides = [1, 1]} : vector<1x8xf32> to vector<1x1xf32>
    %cst_40 = arith.constant 1.000000e+00 : f32
    %149 = vector.broadcast %cst_40 : f32 to vector<1x1xf32>
    %150 = arith.divf %149, %148 : vector<1x1xf32>
    %151 = vector.broadcast %150 : vector<1x1xf32> to vector<1x8xf32>
    %152 = arith.mulf %146, %151 : vector<1x8xf32>
    %153 = vector.broadcast %150 : vector<1x1xf32> to vector<1x8xf32>
    %154 = arith.mulf %147, %153 : vector<1x8xf32>
    %155 = vector.extract_strided_slice %145 {offsets = [0, 0], sizes = [8, 1], strides = [1, 1]} : vector<8x8xf32> to vector<8x1xf32>
    %c0_i32_41 = arith.constant 0 : i32
    %156 = vector.broadcast %c0_i32_41 : i32 to vector<8x8xi32>
    %157 = arith.cmpi eq, %0, %156 : vector<8x8xi32>
    %158 = vector.broadcast %155 : vector<8x1xf32> to vector<8x8xf32>
    %159 = vector.broadcast %152 : vector<1x8xf32> to vector<8x8xf32>
    %160 = arith.mulf %158, %159 : vector<8x8xf32>
    %161 = arith.subf %145, %160 : vector<8x8xf32>
    %162 = vector.shape_cast %152 : vector<1x8xf32> to vector<1x8xf32>
    %163 = vector.broadcast %162 : vector<1x8xf32> to vector<8x8xf32>
    %164 = arith.select %157, %163, %161 : vector<8x8xi1>, vector<8x8xf32>
    %165 = vector.broadcast %155 : vector<8x1xf32> to vector<8x8xf32>
    %166 = vector.broadcast %154 : vector<1x8xf32> to vector<8x8xf32>
    %167 = arith.mulf %165, %166 : vector<8x8xf32>
    %168 = arith.subf %5, %167 : vector<8x8xf32>
    %169 = vector.shape_cast %154 : vector<1x8xf32> to vector<1x8xf32>
    %170 = vector.broadcast %169 : vector<1x8xf32> to vector<8x8xf32>
    %171 = arith.select %157, %170, %168 : vector<8x8xi1>, vector<8x8xf32>
    %172 = vector.extract_strided_slice %164 {offsets = [1, 0], sizes = [1, 8], strides = [1, 1]} : vector<8x8xf32> to vector<1x8xf32>
    %173 = vector.extract_strided_slice %171 {offsets = [1, 0], sizes = [1, 8], strides = [1, 1]} : vector<8x8xf32> to vector<1x8xf32>
    %174 = vector.extract_strided_slice %172 {offsets = [0, 1], sizes = [1, 1], strides = [1, 1]} : vector<1x8xf32> to vector<1x1xf32>
    %cst_42 = arith.constant 1.000000e+00 : f32
    %175 = vector.broadcast %cst_42 : f32 to vector<1x1xf32>
    %176 = arith.divf %175, %174 : vector<1x1xf32>
    %177 = vector.broadcast %176 : vector<1x1xf32> to vector<1x8xf32>
    %178 = arith.mulf %172, %177 : vector<1x8xf32>
    %179 = vector.broadcast %176 : vector<1x1xf32> to vector<1x8xf32>
    %180 = arith.mulf %173, %179 : vector<1x8xf32>
    %181 = vector.extract_strided_slice %164 {offsets = [0, 1], sizes = [8, 1], strides = [1, 1]} : vector<8x8xf32> to vector<8x1xf32>
    %c1_i32_43 = arith.constant 1 : i32
    %182 = vector.broadcast %c1_i32_43 : i32 to vector<8x8xi32>
    %183 = arith.cmpi eq, %0, %182 : vector<8x8xi32>
    %184 = vector.broadcast %181 : vector<8x1xf32> to vector<8x8xf32>
    %185 = vector.broadcast %178 : vector<1x8xf32> to vector<8x8xf32>
    %186 = arith.mulf %184, %185 : vector<8x8xf32>
    %187 = arith.subf %164, %186 : vector<8x8xf32>
    %188 = vector.shape_cast %178 : vector<1x8xf32> to vector<1x8xf32>
    %189 = vector.broadcast %188 : vector<1x8xf32> to vector<8x8xf32>
    %190 = arith.select %183, %189, %187 : vector<8x8xi1>, vector<8x8xf32>
    %191 = vector.broadcast %181 : vector<8x1xf32> to vector<8x8xf32>
    %192 = vector.broadcast %180 : vector<1x8xf32> to vector<8x8xf32>
    %193 = arith.mulf %191, %192 : vector<8x8xf32>
    %194 = arith.subf %171, %193 : vector<8x8xf32>
    %195 = vector.shape_cast %180 : vector<1x8xf32> to vector<1x8xf32>
    %196 = vector.broadcast %195 : vector<1x8xf32> to vector<8x8xf32>
    %197 = arith.select %183, %196, %194 : vector<8x8xi1>, vector<8x8xf32>
    %198 = vector.extract_strided_slice %190 {offsets = [2, 0], sizes = [1, 8], strides = [1, 1]} : vector<8x8xf32> to vector<1x8xf32>
    %199 = vector.extract_strided_slice %197 {offsets = [2, 0], sizes = [1, 8], strides = [1, 1]} : vector<8x8xf32> to vector<1x8xf32>
    %200 = vector.extract_strided_slice %198 {offsets = [0, 2], sizes = [1, 1], strides = [1, 1]} : vector<1x8xf32> to vector<1x1xf32>
    %cst_44 = arith.constant 1.000000e+00 : f32
    %201 = vector.broadcast %cst_44 : f32 to vector<1x1xf32>
    %202 = arith.divf %201, %200 : vector<1x1xf32>
    %203 = vector.broadcast %202 : vector<1x1xf32> to vector<1x8xf32>
    %204 = arith.mulf %198, %203 : vector<1x8xf32>
    %205 = vector.broadcast %202 : vector<1x1xf32> to vector<1x8xf32>
    %206 = arith.mulf %199, %205 : vector<1x8xf32>
    %207 = vector.extract_strided_slice %190 {offsets = [0, 2], sizes = [8, 1], strides = [1, 1]} : vector<8x8xf32> to vector<8x1xf32>
    %c2_i32_45 = arith.constant 2 : i32
    %208 = vector.broadcast %c2_i32_45 : i32 to vector<8x8xi32>
    %209 = arith.cmpi eq, %0, %208 : vector<8x8xi32>
    %210 = vector.broadcast %207 : vector<8x1xf32> to vector<8x8xf32>
    %211 = vector.broadcast %204 : vector<1x8xf32> to vector<8x8xf32>
    %212 = arith.mulf %210, %211 : vector<8x8xf32>
    %213 = arith.subf %190, %212 : vector<8x8xf32>
    %214 = vector.shape_cast %204 : vector<1x8xf32> to vector<1x8xf32>
    %215 = vector.broadcast %214 : vector<1x8xf32> to vector<8x8xf32>
    %216 = arith.select %209, %215, %213 : vector<8x8xi1>, vector<8x8xf32>
    %217 = vector.broadcast %207 : vector<8x1xf32> to vector<8x8xf32>
    %218 = vector.broadcast %206 : vector<1x8xf32> to vector<8x8xf32>
    %219 = arith.mulf %217, %218 : vector<8x8xf32>
    %220 = arith.subf %197, %219 : vector<8x8xf32>
    %221 = vector.shape_cast %206 : vector<1x8xf32> to vector<1x8xf32>
    %222 = vector.broadcast %221 : vector<1x8xf32> to vector<8x8xf32>
    %223 = arith.select %209, %222, %220 : vector<8x8xi1>, vector<8x8xf32>
    %224 = vector.extract_strided_slice %216 {offsets = [3, 0], sizes = [1, 8], strides = [1, 1]} : vector<8x8xf32> to vector<1x8xf32>
    %225 = vector.extract_strided_slice %223 {offsets = [3, 0], sizes = [1, 8], strides = [1, 1]} : vector<8x8xf32> to vector<1x8xf32>
    %226 = vector.extract_strided_slice %224 {offsets = [0, 3], sizes = [1, 1], strides = [1, 1]} : vector<1x8xf32> to vector<1x1xf32>
    %cst_46 = arith.constant 1.000000e+00 : f32
    %227 = vector.broadcast %cst_46 : f32 to vector<1x1xf32>
    %228 = arith.divf %227, %226 : vector<1x1xf32>
    %229 = vector.broadcast %228 : vector<1x1xf32> to vector<1x8xf32>
    %230 = arith.mulf %225, %229 : vector<1x8xf32>
    %231 = vector.extract_strided_slice %216 {offsets = [0, 3], sizes = [8, 1], strides = [1, 1]} : vector<8x8xf32> to vector<8x1xf32>
    %c3_i32_47 = arith.constant 3 : i32
    %232 = vector.broadcast %c3_i32_47 : i32 to vector<8x8xi32>
    %233 = arith.cmpi eq, %0, %232 : vector<8x8xi32>
    %234 = vector.broadcast %231 : vector<8x1xf32> to vector<8x8xf32>
    %235 = vector.broadcast %230 : vector<1x8xf32> to vector<8x8xf32>
    %236 = arith.mulf %234, %235 : vector<8x8xf32>
    %237 = arith.subf %223, %236 : vector<8x8xf32>
    %238 = vector.shape_cast %230 : vector<1x8xf32> to vector<1x8xf32>
    %239 = vector.broadcast %238 : vector<1x8xf32> to vector<8x8xf32>
    %240 = arith.select %233, %239, %237 : vector<8x8xi1>, vector<8x8xf32>
    %241 = vector.extract_strided_slice %240 {offsets = [0, 0], sizes = [8, 1], strides = [1, 1]} : vector<8x8xf32> to vector<8x1xf32>
    %242 = vector.extract_strided_slice %106 {offsets = [0, 0], sizes = [1, 8], strides = [1, 1]} : vector<8x8xf32> to vector<1x8xf32>
    %243 = vector.broadcast %241 : vector<8x1xf32> to vector<8x8xf32>
    %244 = vector.broadcast %242 : vector<1x8xf32> to vector<8x8xf32>
    %245 = arith.mulf %243, %244 : vector<8x8xf32>
    %246 = vector.extract_strided_slice %240 {offsets = [0, 1], sizes = [8, 1], strides = [1, 1]} : vector<8x8xf32> to vector<8x1xf32>
    %247 = vector.extract_strided_slice %106 {offsets = [1, 0], sizes = [1, 8], strides = [1, 1]} : vector<8x8xf32> to vector<1x8xf32>
    %248 = vector.broadcast %246 : vector<8x1xf32> to vector<8x8xf32>
    %249 = vector.broadcast %247 : vector<1x8xf32> to vector<8x8xf32>
    %250 = arith.mulf %248, %249 : vector<8x8xf32>
    %251 = arith.addf %245, %250 : vector<8x8xf32>
    %252 = vector.extract_strided_slice %240 {offsets = [0, 2], sizes = [8, 1], strides = [1, 1]} : vector<8x8xf32> to vector<8x1xf32>
    %253 = vector.extract_strided_slice %106 {offsets = [2, 0], sizes = [1, 8], strides = [1, 1]} : vector<8x8xf32> to vector<1x8xf32>
    %254 = vector.broadcast %252 : vector<8x1xf32> to vector<8x8xf32>
    %255 = vector.broadcast %253 : vector<1x8xf32> to vector<8x8xf32>
    %256 = arith.mulf %254, %255 : vector<8x8xf32>
    %257 = arith.addf %251, %256 : vector<8x8xf32>
    %258 = vector.extract_strided_slice %240 {offsets = [0, 3], sizes = [8, 1], strides = [1, 1]} : vector<8x8xf32> to vector<8x1xf32>
    %259 = vector.extract_strided_slice %106 {offsets = [3, 0], sizes = [1, 8], strides = [1, 1]} : vector<8x8xf32> to vector<1x8xf32>
    %260 = vector.broadcast %258 : vector<8x1xf32> to vector<8x8xf32>
    %261 = vector.broadcast %259 : vector<1x8xf32> to vector<8x8xf32>
    %262 = arith.mulf %260, %261 : vector<8x8xf32>
    %263 = arith.addf %257, %262 : vector<8x8xf32>
    %c4_i32_48 = arith.constant 4 : i32
    %264 = vector.broadcast %c4_i32_48 : i32 to vector<1x8xi32>
    %265 = arith.cmpi slt, %2, %264 : vector<1x8xi32>
    %266 = arith.subf %137, %57 : vector<1x8xf32>
    %cst_49 = arith.constant 0.000000e+00 : f32
    %267 = vector.broadcast %cst_49 : f32 to vector<1x8xf32>
    %268 = arith.select %265, %266, %267 : vector<1x8xi1>, vector<1x8xf32>
    %269 = vector.extract_strided_slice %268 {offsets = [0, 0], sizes = [1, 1], strides = [1, 1]} : vector<1x8xf32> to vector<1x1xf32>
    %270 = vector.extract_strided_slice %263 {offsets = [0, 0], sizes = [1, 8], strides = [1, 1]} : vector<8x8xf32> to vector<1x8xf32>
    %271 = vector.broadcast %269 : vector<1x1xf32> to vector<1x8xf32>
    %272 = arith.mulf %271, %270 : vector<1x8xf32>
    %273 = vector.extract_strided_slice %268 {offsets = [0, 1], sizes = [1, 1], strides = [1, 1]} : vector<1x8xf32> to vector<1x1xf32>
    %274 = vector.extract_strided_slice %263 {offsets = [1, 0], sizes = [1, 8], strides = [1, 1]} : vector<8x8xf32> to vector<1x8xf32>
    %275 = vector.broadcast %273 : vector<1x1xf32> to vector<1x8xf32>
    %276 = arith.mulf %275, %274 : vector<1x8xf32>
    %277 = arith.addf %272, %276 : vector<1x8xf32>
    %278 = vector.extract_strided_slice %268 {offsets = [0, 2], sizes = [1, 1], strides = [1, 1]} : vector<1x8xf32> to vector<1x1xf32>
    %279 = vector.extract_strided_slice %263 {offsets = [2, 0], sizes = [1, 8], strides = [1, 1]} : vector<8x8xf32> to vector<1x8xf32>
    %280 = vector.broadcast %278 : vector<1x1xf32> to vector<1x8xf32>
    %281 = arith.mulf %280, %279 : vector<1x8xf32>
    %282 = arith.addf %277, %281 : vector<1x8xf32>
    %283 = vector.extract_strided_slice %268 {offsets = [0, 3], sizes = [1, 1], strides = [1, 1]} : vector<1x8xf32> to vector<1x1xf32>
    %284 = vector.extract_strided_slice %263 {offsets = [3, 0], sizes = [1, 8], strides = [1, 1]} : vector<8x8xf32> to vector<1x8xf32>
    %285 = vector.broadcast %283 : vector<1x1xf32> to vector<1x8xf32>
    %286 = arith.mulf %285, %284 : vector<1x8xf32>
    %287 = arith.addf %282, %286 : vector<1x8xf32>
    %288 = arith.addf %57, %287 : vector<1x8xf32>
    %289 = vector.extract_strided_slice %106 {offsets = [0, 0], sizes = [8, 1], strides = [1, 1]} : vector<8x8xf32> to vector<8x1xf32>
    %290 = vector.extract_strided_slice %263 {offsets = [0, 0], sizes = [1, 8], strides = [1, 1]} : vector<8x8xf32> to vector<1x8xf32>
    %291 = vector.broadcast %289 : vector<8x1xf32> to vector<8x8xf32>
    %292 = vector.broadcast %290 : vector<1x8xf32> to vector<8x8xf32>
    %293 = arith.mulf %291, %292 : vector<8x8xf32>
    %294 = vector.extract_strided_slice %106 {offsets = [0, 1], sizes = [8, 1], strides = [1, 1]} : vector<8x8xf32> to vector<8x1xf32>
    %295 = vector.extract_strided_slice %263 {offsets = [1, 0], sizes = [1, 8], strides = [1, 1]} : vector<8x8xf32> to vector<1x8xf32>
    %296 = vector.broadcast %294 : vector<8x1xf32> to vector<8x8xf32>
    %297 = vector.broadcast %295 : vector<1x8xf32> to vector<8x8xf32>
    %298 = arith.mulf %296, %297 : vector<8x8xf32>
    %299 = arith.addf %293, %298 : vector<8x8xf32>
    %300 = vector.extract_strided_slice %106 {offsets = [0, 2], sizes = [8, 1], strides = [1, 1]} : vector<8x8xf32> to vector<8x1xf32>
    %301 = vector.extract_strided_slice %263 {offsets = [2, 0], sizes = [1, 8], strides = [1, 1]} : vector<8x8xf32> to vector<1x8xf32>
    %302 = vector.broadcast %300 : vector<8x1xf32> to vector<8x8xf32>
    %303 = vector.broadcast %301 : vector<1x8xf32> to vector<8x8xf32>
    %304 = arith.mulf %302, %303 : vector<8x8xf32>
    %305 = arith.addf %299, %304 : vector<8x8xf32>
    %306 = vector.extract_strided_slice %106 {offsets = [0, 3], sizes = [8, 1], strides = [1, 1]} : vector<8x8xf32> to vector<8x1xf32>
    %307 = vector.extract_strided_slice %263 {offsets = [3, 0], sizes = [1, 8], strides = [1, 1]} : vector<8x8xf32> to vector<1x8xf32>
    %308 = vector.broadcast %306 : vector<8x1xf32> to vector<8x8xf32>
    %309 = vector.broadcast %307 : vector<1x8xf32> to vector<8x8xf32>
    %310 = arith.mulf %308, %309 : vector<8x8xf32>
    %311 = arith.addf %305, %310 : vector<8x8xf32>
    %312 = arith.subf %106, %311 : vector<8x8xf32>
    %c0_50 = arith.constant 0 : index
    %c0_51 = arith.constant 0 : index
    %313 = vector.load %arg3[%c0_50, %c0_51] : memref<1x8xf32, #tpu.memory_space<vmem>>, vector<1x8xf32>
    tpu.vector_store %arg3[%c0_50, %c0_51], %288 {strides = array<i32>} : memref<1x8xf32, #tpu.memory_space<vmem>>, vector<1x8xf32>,
    %c0_52 = arith.constant 0 : index
    %c0_53 = arith.constant 0 : index
    %314 = vector.load %arg4[%c0_52, %c0_53] : memref<8x8xf32, #tpu.memory_space<vmem>>, vector<8x8xf32>
    tpu.vector_store %arg4[%c0_52, %c0_53], %312 {strides = array<i32>} : memref<8x8xf32, #tpu.memory_space<vmem>>, vector<8x8xf32>,
    return
  }
}

</mosaic_0001>

<bundles_post_ra>
// kernel: kf_forward.1
= control target key start
LH: loop header
LB: loop body
LE: loop exit
PB: predicated region body
PF: predicated region fallthrough
CT: control target
= control target key end

     0   :  { %10 = vsyncpa [#allocation4], 0  ;;  %s705_s0 = inlined_call_operand.vmem [shape: f32[4], index: 0, kind: input, shape index: {}]   ;;  %s706_s1 = inlined_call_operand.vmem [shape: f32[1,8], index: 1, kind: input, shape index: {}]   ;;  %s707_s2 = inlined_call_operand.vmem [shape: f32[8,8], index: 2, kind: input, shape index: {}]   ;;  %s708_s3 = inlined_call_operand.vmem [shape: f32[1,8], index: 3, kind: output, shape index: {0}]   ;;  %s709_s4 = inlined_call_operand.hbm [shape: f32[8,8], index: 4, kind: output, shape index: {1}]  }
   0x1   :  { %11 = vsyncpa [#allocation3], 0  ;;  %s17_s17 = sshll.u32 %s705_s0, 4  ;;  %s495_s18 = smov [#allocation2]   ;;  %s18_s17 = int_to_ptr.vmem [resolvable:$true] %s17_s17 }
   0x2   :  { %20 = dma.vmem_to_smem %s18_s17, 16, %s495_s18, [#allocation4]  }
   0x3   :  { %491 = dma.done.wait [#allocation4], 16  }
   0x4   :  { %492 = vsyncadd [#allocation4], 4294967280 }
   0x5   :  { %29 = sfence }
   0x6   :  { %v49_v0 = vld [vmem:[%s707_s2] sm:$0xff]  ;;  %v496_v1 = vmov 4   ;;  %v497_v2 = vmov 6   ;;  %v498_v3 = vmov 5   ;;  %v499_v4 = vmov 0   ;;  %s634_s21 = sld [smem:[#allocation2 + $0x2]] }
   0x7   :  { %418 = vset.pattern.permute.xlu0 %v496_v1  ;;  %420 = vset.pattern.permute.xlu1 %v497_v2  ;;  %v30_v5 = vlaneseq  ;;  %v500_v16 = vmov 0.0   ;;  %v501_v47 = vmov 1   ;;  %s403_s24 = sld [smem:[#allocation2 + $0x1]]  ;;  %s504_s9 = smov [#allocation5]  }
   0x8   :  { %77 = vperm.xlu0 %418, %v49_v0   ;;  %88 = vperm.xlu1 %420, %v49_v0   ;;  %s405_s25 = sld [smem:[#allocation2 + $0x3]]  ;;  %s388_s10 = sshll.u32 %s504_s9, 4  ;;  %s389_s10 = int_to_ptr.vmem [resolvable:$true] %s388_s10 }
   0x9   :  { %422 = vset.pattern.permute.xlu2 %v499_v4  ;;  %v541_v7 = vand.u32 127, %v30_v5  ;;  %v553_v14 = vshrl.u32 %v30_v5, 7  ;;  %v502_v5 = vmov 2   ;;  %s390_s13 = sshll.u32 %s709_s4, 4  ;;  %s391_s13 = int_to_ptr.hbm [resolvable:$true] %s390_s13 }
   0xb   :  { %vm50_vm0 = vcmp.eq.s32.totalorder %v541_v7, 0  ;;  %vm58_vm1 = vcmp.eq.s32.totalorder %v541_v7, 1  ;;  %vm66_vm2 = vcmp.eq.s32.totalorder %v541_v7, 2  ;;  %vm39_vm3 = vcmp.lt.s32.totalorder %v541_v7, 7 }
   0xc   :  { %vm38_vm4 = vcmp.lt.s32.totalorder %v541_v7, 6  ;;  %v40_v17 = vsel %vm39_vm3, 0.0001, %v500_v16  ;;  %vm37_vm5 = vcmp.lt.s32.totalorder %v541_v7, 4  ;;  %vm94_vm6 = vcmp.eq.s32.totalorder %v553_v14, 0 }
   0xd   :  { %vm97_vm7 = vcmp.eq.s32.totalorder %v553_v14, 1  ;;  %v41_v19 = vsel %vm38_vm4, 0.01, %v40_v17  ;;  %vm101_vm8 = vcmp.eq.s32.totalorder %v553_v14, 2  ;;  %vm44_vm9 = vcmp.lt.s32.totalorder %v541_v7, 2 }
   0xe   :  { %vm34_vm10 = vcmp.eq.s32.totalorder %v553_v14, %v541_v7  ;;  %v42_v25 = vsel %vm37_vm5, 1.0, %v41_v19  ;;  %v45_v26 = vsel %vm37_vm5, 10.0, %v500_v16  ;;  %vm146_vm11 = vcmp.lt.s32.totalorder %v553_v14, 4  ;;  %v610_v17 = vld [vmem:[%s706_s1] sm:$0x1]  ;;  %s632_s1 = sld [smem:[#allocation2]] }
   0xf   :  { %v43_v30 = vsel %vm34_vm10, %v42_v25, 0.0  ;;  %v46_v31 = vsel %vm44_vm9, 1.0, %v45_v26  ;;  %vm147_vm12 = vmand %vm146_vm11, %vm37_vm5  ;;  %s117_s26 = ssub.f32 %s405_s25, %s403_s24 }
  0x10   :  { %419 = vset.pattern.permute.xlu0 %v498_v3  ;;  %421 = vset.pattern.permute.xlu1 %v499_v4  ;;  %v47_v33 = vsel %vm34_vm10, %v46_v31, 0.0  ;;  %s113_s30 = sadd.f32 %s405_s25, %s403_s24 }
  0x11   :  { %82 = vperm.xlu0 %419, %v49_v0   ;;  %s118_s27 = sadd.f32 1.0, %s117_s26 }
  0x12   :  { %s114_s7 = smul.f32 0.5, %s113_s30 }
  0x14   :  { %s115_s22 = ssub.f32 %s634_s21, %s632_s1 }
  0x15   :  { %s111_s6 = sadd.f32 %s634_s21, %s632_s1 }
  0x16   :  { %s640_s23 = sadd.f32 1.0, %s115_s22 }
  0x17   :  { %s112_s8 = smul.f32 0.5, %s111_s6 }
  0x18   :  { %s119_s5 = smul.f32 %s118_s27, %s640_s23 }
  0x19   :  { %426 = vset.pattern.permute.xlu0 %v502_v5 }
  0x7a   :  { %v78_v6 = vpop.permute.xlu0 %77  ;;  %v89_v8 = vpop.permute.xlu1 %88 }
  0x7b   :  { %v80_v10 = vsel %vm50_vm0, %v78_v6, 0.0  ;;  %v91_v12 = vsel %vm66_vm2, %v89_v8, 0.0 }
  0x83   :  { %v83_v9 = vpop.permute.xlu0 %82 }
  0x84   :  { %v85_v11 = vsel %vm58_vm1, %v83_v9, 0.0 }
  0x85   :  { %v86_v13 = vadd.f32 %v85_v11, %v80_v10 }
  0x87   :  { %v92_v15 = vadd.f32 %v91_v12, %v86_v13 }
  0x89   :  { %v93_v18 = vadd.f32 %v92_v15, %v49_v0 }
  0x8b   :  { %v95_v20 = vperm.slane %v93_v18, 4  ;;  %v98_v21 = vperm.slane %v93_v18, 5  ;;  %v102_v22 = vperm.slane %v93_v18, 6 }
  0x8d   :  { %v96_v23 = vsel %vm94_vm6, %v95_v20, 0.0  ;;  %v99_v24 = vsel %vm97_vm7, %v98_v21, 0.0  ;;  %v103_v28 = vsel %vm101_vm8, %v102_v22, 0.0 }
  0x8e   :  { %v100_v27 = vadd.f32 %v99_v24, %v96_v23 }
  0x90   :  { %v104_v29 = vadd.f32 %v103_v28, %v100_v27 }
  0x92   :  { %v105_v32 = vadd.f32 %v104_v29, %v93_v18 }
  0x94   :  { %v584_v34 = vadd.f32 %v105_v32, %v43_v30 }
  0x96   :  { %v148_v35 = vsel %vm147_vm12, %v584_v34, 0.0 }
  0x97   :  { %v149_v36 = vadd.f32 %v148_v35, %v47_v33 }
  0x99   :  { %174 = vperm.xlu2 %422, %v149_v36   ;;  %445 = vrcp.f32 %v149_v36  ;;  %v161_v40 = vand.u32 2147483648, %v149_v36  ;;  %v159_v42 = vand.u32 2147483647, %v149_v36  ;;  %vm155_vm14 = vweird.f32 %v149_v36 }
  0x9b   :  { %v162_v44 = vor.u32 1.1754944e-38, %v161_v40  ;;  %vm160_vm3 = vcmp.eq.f32.partialorder %v159_v42, 8.507059e+37 }
  0x9f   :  { %v446_v37 = vpop.eup %445 }
  0xa0   :  { %v151_v38 = vmul.f32 %v446_v37, %v149_v36  ;;  %vm156_vm13 = vweird.f32 %v446_v37 }
  0xa1   :  { %vm157_vm15 = vmor %vm155_vm14, %vm156_vm13  ;;  %423 = vset.pattern.permute.xlu2 %v501_v47 }
  0xa2   :  { %v152_v39 = vsub.f32 1.0, %v151_v38 }
  0xa4   :  { %v153_v41 = vmul.f32 %v446_v37, %v152_v39 }
  0xa6   :  { %v154_v43 = vadd.f32 %v446_v37, %v153_v41 }
  0xa8   :  { %v158_v45 = vsel %vm157_vm15, %v446_v37, %v154_v43 }
  0xa9   :  { %v163_v46 = vsel %vm160_vm3, %v162_v44, %v158_v45 }
  0xaa   :  { %167 = vperm.xlu1 %421, %v163_v46  }
  0xb2   :  { %424 = vset.pattern.permute.xlu1 %v501_v47 }
  0xf3   :  { %v592_v51 = vpop.permute.xlu2 %174 }
 0x11c   :  { %v589_v48 = vpop.permute.xlu1 %167 }
 0x11d   :  { %v170_v49 = vmul.f32 %v589_v48, %v149_v36 }
 0x11f   :  { %v177_v50 = vperm.slane %v170_v49, 0 }
 0x121   :  { %v178_v52 = vmul.f32 %v177_v50, %v592_v51 }
 0x123   :  { %v179_v53 = vsub.f32 %v149_v36, %v178_v52 }
 0x125   :  { %v180_v54 = vsel %vm94_vm6, %v177_v50, %v179_v53 }
 0x126   :  { %447 = vrcp.f32 %v180_v54  ;;  %209 = vperm.xlu1 %424, %v180_v54   ;;  %v196_v58 = vand.u32 2147483648, %v180_v54  ;;  %v194_v60 = vand.u32 2147483647, %v180_v54  ;;  %vm190_vm9 = vweird.f32 %v180_v54 }
 0x128   :  { %v197_v62 = vor.u32 1.1754944e-38, %v196_v58  ;;  %vm195_vm12 = vcmp.eq.f32.partialorder %v194_v60, 8.507059e+37 }
 0x12c   :  { %v448_v55 = vpop.eup %447 }
 0x12d   :  { %v186_v56 = vmul.f32 %v448_v55, %v180_v54  ;;  %vm191_vm4 = vweird.f32 %v448_v55 }
 0x12e   :  { %vm192_vm11 = vmor %vm190_vm9, %vm191_vm4 }
 0x12f   :  { %v187_v57 = vsub.f32 1.0, %v186_v56 }
 0x131   :  { %v188_v59 = vmul.f32 %v448_v55, %v187_v57 }
 0x133   :  { %v189_v61 = vadd.f32 %v448_v55, %v188_v59 }
 0x135   :  { %v193_v63 = vsel %vm192_vm11, %v448_v55, %v189_v61 }
 0x136   :  { %v198_v0 = vsel %vm195_vm12, %v197_v62, %v193_v63 }
 0x137   :  { %202 = vperm.xlu2 %423, %v198_v0  }
 0x13f   :  { %425 = vset.pattern.permute.xlu2 %v502_v5 }
 0x191   :  { %v599_v6 = vpop.permute.xlu2 %202 }
 0x192   :  { %v205_v8 = vmul.f32 %v599_v6, %v180_v54 }
 0x194   :  { %v212_v9 = vperm.slane %v205_v8, 1 }
 0x198   :  { %v602_v10 = vpop.permute.xlu1 %209 }
 0x199   :  { %v213_v11 = vmul.f32 %v212_v9, %v602_v10 }
 0x19b   :  { %v214_v12 = vsub.f32 %v180_v54, %v213_v11 }
 0x19d   :  { %v215_v13 = vsel %vm97_vm7, %v212_v9, %v214_v12 }
 0x19e   :  { %449 = vrcp.f32 %v215_v13  ;;  %244 = vperm.xlu0 %426, %v215_v13   ;;  %v231_v20 = vand.u32 2147483648, %v215_v13  ;;  %v229_v22 = vand.u32 2147483647, %v215_v13  ;;  %vm225_vm14 = vweird.f32 %v215_v13 }
 0x1a0   :  { %v232_v24 = vor.u32 1.1754944e-38, %v231_v20  ;;  %vm230_vm3 = vcmp.eq.f32.partialorder %v229_v22, 8.507059e+37 }
 0x1a4   :  { %v450_v15 = vpop.eup %449 }
 0x1a5   :  { %v221_v18 = vmul.f32 %v450_v15, %v215_v13  ;;  %vm226_vm13 = vweird.f32 %v450_v15 }
 0x1a6   :  { %431 = vset.pattern.permute.xlu0 %v497_v2  ;;  %vm227_vm15 = vmor %vm225_vm14, %vm226_vm13  ;;  %v503_v2 = vmov 3  }
 0x1a7   :  { %68 = vperm.xlu0 %431, %v610_v17   ;;  %v222_v19 = vsub.f32 1.0, %v221_v18  ;;  %428 = vset.pattern.permute.xlu1 %v503_v2 }
 0x1a9   :  { %v223_v21 = vmul.f32 %v450_v15, %v222_v19 }
 0x1ab   :  { %v224_v23 = vadd.f32 %v450_v15, %v223_v21 }
 0x1ad   :  { %v228_v25 = vsel %vm227_vm15, %v450_v15, %v224_v23 }
 0x1ae   :  { %v233_v26 = vsel %vm230_vm3, %v232_v24, %v228_v25  ;;  %v140_v25 = vstv %s119_s5 }
 0x1af   :  { %432 = vset.pattern.permute.xlu0 %v499_v4  ;;  %237 = vperm.xlu2 %425, %v233_v26  }
 0x1b0   :  { %350 = vperm.xlu0 %432, %v584_v34  }
 0x1b7   :  { %427 = vset.pattern.permute.xlu2 %v503_v2 }
 0x1b8   :  { %441 = vset.pattern.permute.xlu0 %v502_v5 }
 0x209   :  { %v619_v27 = vpop.permute.xlu2 %237 }
 0x20a   :  { %v240_v28 = vmul.f32 %v619_v27, %v215_v13 }
 0x20c   :  { %v247_v29 = vperm.slane %v240_v28, 2 }
 0x210   :  { %v622_v30 = vpop.permute.xlu0 %244 }
 0x211   :  { %v248_v31 = vmul.f32 %v247_v29, %v622_v30 }
 0x213   :  { %v249_v32 = vsub.f32 %v215_v13, %v248_v31 }
 0x215   :  { %v250_v33 = vsel %vm101_vm8, %v247_v29, %v249_v32  ;;  %v142_v32 = vstv %s114_s7 }
 0x216   :  { %451 = vrcp.f32 %v250_v33  ;;  %279 = vperm.xlu2 %427, %v250_v33   ;;  %v266_v38 = vand.u32 2147483648, %v250_v33  ;;  %v264_v40 = vand.u32 2147483647, %v250_v33  ;;  %vm260_vm9 = vweird.f32 %v250_v33 }
 0x218   :  { %v267_v42 = vor.u32 1.1754944e-38, %v266_v38  ;;  %vm265_vm12 = vcmp.eq.f32.partialorder %v264_v40, 8.507059e+37 }
 0x219   :  { %v69_v22 = vpop.permute.xlu0 %68 }
 0x21a   :  { %v71_v26 = vperm.slane %v69_v22, 0 }
 0x21c   :  { %v452_v35 = vpop.eup %451 }
 0x21d   :  { %v256_v36 = vmul.f32 %v452_v35, %v250_v33  ;;  %vm261_vm4 = vweird.f32 %v452_v35 }
 0x21e   :  { %430 = vset.pattern.permute.xlu2 %v498_v3  ;;  %vm262_vm11 = vmor %vm260_vm9, %vm261_vm4  ;;  %v120_v3 = vstv %s640_s23 }
 0x21f   :  { %v257_v37 = vsub.f32 1.0, %v256_v36  ;;  %60 = vperm.xlu2 %430, %v610_v17   ;;  %453 = vrcp.f32 %v120_v3  ;;  %v132_v50 = vand.u32 2147483648, %v120_v3  ;;  %vm126_vm13 = vweird.f32 %v120_v3 }
 0x220   :  { %v130_v53 = vand.u32 2147483647, %v120_v3 }
 0x221   :  { %v258_v39 = vmul.f32 %v452_v35, %v257_v37  ;;  %v133_v54 = vor.u32 1.1754944e-38, %v132_v50  ;;  %v144_v37 = vstv %s112_s8 }
 0x222   :  { %vm131_vm3 = vcmp.eq.f32.partialorder %v130_v53, 8.507059e+37 }
 0x223   :  { %v259_v41 = vadd.f32 %v452_v35, %v258_v39 }
 0x225   :  { %v263_v43 = vsel %vm262_vm11, %v452_v35, %v259_v41 }
 0x226   :  { %v268_v44 = vsel %vm265_vm12, %v267_v42, %v263_v43 }
 0x227   :  { %272 = vperm.xlu1 %428, %v268_v44   ;;  %434 = vset.pattern.permute.xlu2 %v499_v4  ;;  %v291_v44 = vperm.slane %v584_v34, 0 }
 0x22f   :  { %429 = vset.pattern.permute.xlu1 %v496_v1  ;;  %v454_v1 = vpop.eup %453 }
 0x230   :  { %53 = vperm.xlu1 %429, %v610_v17   ;;  %v122_v45 = vmul.f32 %v454_v1, %v120_v3  ;;  %vm127_vm14 = vweird.f32 %v454_v1  ;;  %v297_v3 = vperm.slane %v584_v34, 1 }
 0x231   :  { %vm128_vm15 = vmor %vm126_vm13, %vm127_vm14 }
 0x232   :  { %v123_v46 = vsub.f32 1.0, %v122_v45 }
 0x234   :  { %v124_v49 = vmul.f32 %v454_v1, %v123_v46 }
 0x236   :  { %v125_v52 = vadd.f32 %v454_v1, %v124_v49  ;;  %v304_v49 = vperm.slane %v584_v34, 2 }
 0x238   :  { %433 = vset.pattern.permute.xlu1 %v501_v47  ;;  %v129_v55 = vsel %vm128_vm15, %v454_v1, %v125_v52  ;;  %v311_v52 = vperm.slane %v584_v34, 3 }
 0x239   :  { %356 = vperm.xlu1 %433, %v584_v34   ;;  %v134_v56 = vsel %vm131_vm3, %v133_v54, %v129_v55 }
 0x23a   :  { %406 = vpush %v134_v56 }
 0x241   :  { %435 = vset.pattern.permute.xlu1 %v499_v4  ;;  %v402_v4 = vsel %vm34_vm10, 1.0, %v500_v16 }
 0x242   :  { %v171_v57 = vmul.f32 %v402_v4, %v589_v48 }
 0x244   :  { %v181_v58 = vperm.slane %v171_v57, 0 }
 0x246   :  { %v182_v59 = vmul.f32 %v181_v58, %v592_v51 }
 0x248   :  { %v183_v60 = vsub.f32 %v402_v4, %v182_v59 }
 0x24a   :  { %v184_v61 = vsel %vm94_vm6, %v181_v58, %v183_v60  ;;  %vm137_vm6 = vcmp.eq.s32.totalorder %v541_v7, 3 }
 0x24b   :  { %v206_v62 = vmul.f32 %v599_v6, %v184_v61 }
 0x24d   :  { %v216_v63 = vperm.slane %v206_v62, 1 }
 0x24f   :  { %v217_v0 = vmul.f32 %v216_v63, %v602_v10 }
 0x251   :  { %v218_v8 = vsub.f32 %v184_v61, %v217_v0 }
 0x253   :  { %v219_v16 = vsel %vm97_vm7, %v216_v63, %v218_v8  ;;  %vm276_vm7 = vcmp.eq.s32.totalorder %v553_v14, 3  ;;  %v72_v14 = vsel %vm66_vm2, %v71_v26, 0.0 }
 0x254   :  { %v241_v48 = vmul.f32 %v619_v27, %v219_v16 }
 0x256   :  { %v251_v9 = vperm.slane %v241_v48, 2 }
 0x258   :  { %v252_v51 = vmul.f32 %v251_v9, %v622_v30 }
 0x25a   :  { %v253_v6 = vsub.f32 %v219_v16, %v252_v51 }
 0x25c   :  { %v254_v12 = vsel %vm101_vm8, %v251_v9, %v253_v6 }
 0x26b   :  { %s407_s28 = spop %406 }
 0x26c   :  { %s136_s29 = smul.f32 %s407_s28, %s118_s27 }
 0x26e   :  { %v138_v19 = vstv %s136_s29 }
 0x26f   :  { %v139_v24 = vsel %vm137_vm6, %v138_v19, 0.0 }
 0x270   :  { %v280_v11 = vpop.permute.xlu2 %279  ;;  %v141_v31 = vsel %vm66_vm2, %v140_v25, %v139_v24 }
 0x271   :  { %v143_v36 = vsel %vm58_vm1, %v142_v32, %v141_v31 }
 0x272   :  { %v145_v39 = vsel %vm50_vm0, %v144_v37, %v143_v36 }
 0x279   :  { %v61_v18 = vpop.permute.xlu2 %60 }
 0x27a   :  { %v63_v21 = vperm.slane %v61_v18, 0 }
 0x27c   :  { %v64_v29 = vsel %vm58_vm1, %v63_v21, 0.0  ;;  %vm379_vm1 = vcmask 64512  }
 0x299   :  { %v273_v10 = vpop.permute.xlu1 %272 }
 0x29a   :  { %v275_v13 = vmul.f32 %v273_v10, %v254_v12 }
 0x29c   :  { %v282_v15 = vperm.slane %v275_v13, 3 }
 0x29e   :  { %v283_v20 = vmul.f32 %v282_v15, %v280_v11 }
 0x2a0   :  { %v284_v23 = vsub.f32 %v254_v12, %v283_v20 }
 0x2a2   :  { %v54_v27 = vpop.permute.xlu1 %53  ;;  %v285_v28 = vsel %vm276_vm7, %v282_v15, %v284_v23 }
 0x2a3   :  { %v56_v30 = vperm.slane %v54_v27, 0  ;;  %288 = vperm.xlu1 %435, %v285_v28  }
 0x2a5   :  { %v57_v33 = vsel %vm50_vm0, %v56_v30, 0.0  ;;  %vm377_vm0 = vcmask 57344  }
 0x2a6   :  { %v65_v35 = vadd.f32 %v64_v29, %v57_v33 }
 0x2a8   :  { %v73_v38 = vadd.f32 %v72_v14, %v65_v35 }
 0x2aa   :  { %v678_v40 = vadd.f32 %v73_v38, %v610_v17 }
 0x2ab   :  { %437 = vset.pattern.permute.xlu1 %v502_v5  ;;  %v357_v17 = vpop.permute.xlu1 %356 }
 0x2ac   :  { %301 = vperm.xlu1 %437, %v285_v28   ;;  %v314_v41 = vsub.f32 %v145_v39, %v678_v40 }
 0x2ae   :  { %v315_v42 = vsel %vm37_vm5, %v314_v41, 0.0 }
 0x2af   :  { %318 = vperm.xlu2 %434, %v315_v42   ;;  %332 = vperm.xlu0 %441, %v315_v42  }
 0x2b4   :  { %438 = vset.pattern.permute.xlu1 %v501_v47 }
 0x2b5   :  { %323 = vperm.xlu1 %438, %v315_v42  }
 0x2b7   :  { %436 = vset.pattern.permute.xlu2 %v501_v47  ;;  %444 = vset.pattern.permute.xlu0 %v503_v2 }
 0x2b8   :  { %294 = vperm.xlu2 %436, %v285_v28  }
 0x2bd   :  { %442 = vset.pattern.permute.xlu1 %v503_v2 }
 0x2be   :  { %370 = vperm.xlu1 %442, %v584_v34  }
 0x2c0   :  { %439 = vset.pattern.permute.xlu2 %v503_v2 }
 0x2c1   :  { %308 = vperm.xlu2 %439, %v285_v28  }
 0x2c9   :  { %440 = vset.pattern.permute.xlu2 %v502_v5 }
 0x2ca   :  { %363 = vperm.xlu2 %440, %v584_v34  }
 0x2d2   :  { %443 = vset.pattern.permute.xlu2 %v503_v2  ;;  %v351_v2 = vpop.permute.xlu0 %350 }
 0x2d3   :  { %340 = vperm.xlu2 %443, %v315_v42  }
 0x309   :  { %v319_v7 = vpop.permute.xlu2 %318 }
 0x312   :  { %v295_v47 = vpop.permute.xlu2 %294 }
 0x313   :  { %v298_v46 = vmul.f32 %v297_v3, %v295_v47 }
 0x315   :  { %v289_v43 = vpop.permute.xlu1 %288 }
 0x316   :  { %v292_v1 = vmul.f32 %v291_v44, %v289_v43 }
 0x318   :  { %v299_v5 = vadd.f32 %v298_v46, %v292_v1 }
 0x31b   :  { %v309_v45 = vpop.permute.xlu2 %308 }
 0x31c   :  { %v312_v54 = vmul.f32 %v311_v52, %v309_v45 }
 0x31e   :  { %v302_v50 = vpop.permute.xlu1 %301 }
 0x31f   :  { %v305_v53 = vmul.f32 %v304_v49, %v302_v50 }
 0x321   :  { %v306_v55 = vadd.f32 %v305_v53, %v299_v5  ;;  %v333_v16 = vpop.permute.xlu0 %332 }
 0x323   :  { %v313_v56 = vadd.f32 %v312_v54, %v306_v55 }
 0x324   :  { %v364_v4 = vpop.permute.xlu2 %363 }
 0x325   :  { %v353_v57 = vperm.slane %v313_v56, 0  ;;  %v359_v58 = vperm.slane %v313_v56, 1  ;;  %v327_v59 = vrot.slane %v313_v56, 1  ;;  %v335_v61 = vrot.slane %v313_v56, 2 }
 0x326   :  { %v321_v62 = vmul.f32 %v319_v7, %v313_v56  ;;  %v366_v9 = vperm.slane %v313_v56, 2  ;;  %v343_v11 = vrot.slane %v313_v56, 3  ;;  %v373_v18 = vperm.slane %v313_v56, 3 }
 0x327   :  { %v324_v60 = vpop.permute.xlu1 %323  ;;  %v354_v0 = vmul.f32 %v353_v57, %v351_v2  ;;  %v360_v8 = vmul.f32 %v359_v58, %v357_v17  ;;  %v337_v51 = vmul.f32 %v335_v61, %v333_v16 }
 0x328   :  { %v329_v63 = vmul.f32 %v327_v59, %v324_v60  ;;  %v367_v15 = vmul.f32 %v366_v9, %v364_v4 }
 0x329   :  { %v361_v6 = vadd.f32 %v360_v8, %v354_v0 }
 0x32a   :  { %v330_v48 = vadd.f32 %v329_v63, %v321_v62 }
 0x32b   :  { %v368_v21 = vadd.f32 %v367_v15, %v361_v6 }
 0x32c   :  { %v338_v12 = vadd.f32 %v337_v51, %v330_v48 }
 0x32d   :  { %v341_v10 = vpop.permute.xlu2 %340 }
 0x32e   :  { %v345_v13 = vmul.f32 %v343_v11, %v341_v10 }
 0x330   :  { %v346_v19 = vadd.f32 %v345_v13, %v338_v12  ;;  %v371_v20 = vpop.permute.xlu1 %370 }
 0x331   :  { %v374_v22 = vmul.f32 %v373_v18, %v371_v20 }
 0x332   :  { %v347_v23 = vadd.f32 %v346_v19, %v678_v40 }
 0x333   :  { %v375_v24 = vadd.f32 %v374_v22, %v368_v21 }
 0x334   :  { %378 = vst.msk [vmem:[%s708_s3] sm:$0x1] %vm377_vm0, %v347_v23 }
 0x335   :  { %v376_v25 = vsub.f32 %v584_v34, %v375_v24 }
 0x337   :  { %380 = vst.msk [vmem:[#allocation5] sm:$0xff] %vm379_vm1, %v376_v25 }
 0x338   :  { %393 = dma.vmem_to_hbm [thread:$0]  %s389_s10, 128, %s391_s13, [#allocation3]  }
 0x339   :  { %493 = dma.done.wait [#allocation3], 128  }
 0x33a   :  { %494 = vsyncadd [#allocation3], 4294967168 }
 0x33b   :  { %400 = vsyncpa [#allocation3], 1 }
 0x33c   :  { %401 = vsyncpa [#allocation4], 1 }

</bundles_post_ra>
